<compile_context>
chip_gen: v6e
topology: v6e:2x2x1
jax: 0.10.0
libtpu: 0.0.40
codegen_flags: <defaults>
</compile_context>

<pallas_src>
import functools

import jax
import jax.numpy as jnp
from jax.experimental import pallas as pl
from jax.experimental.pallas import tpu as pltpu


# ----------------------------- fused Pallas kernel ------------------------- #

def daggnn_fused_kernel(x_ref, w1_ref, b1_ref, ms_ref, cs_ref, w4_ref, b4_ref,
                        out_ref):
    """Fused DAG-GNN enc+dec on a lane-transposed activation tile.

    x_ref   : (d, tn)    input tile, X^T
    w1_ref  : (d, d)     fc1 weight (used untransposed: W1 @ x^T)
    b1_ref  : (d, 1)     fc1 bias column
    ms_ref  : (4d, d)    stacked composite matrix [W2; Aft@W2; Ait@Aft@W2; W3@..]
    cs_ref  : (4d, 1)    stacked composite bias   [b2; c_logits; c_matz; c_preH3]
    w4_ref  : (d, d)     out_fc2 weight
    b4_ref  : (d, 1)     out_fc2 bias column
    out_ref : (4d, tn)   stacked output rows [x_enc; logits; mat_z; out]
    """
    d = w1_ref.shape[0]

    # encoder fc1 + relu
    h1 = jnp.maximum(
        jnp.dot(w1_ref[...], x_ref[...], preferred_element_type=jnp.float32)
        + b1_ref[...], 0.0)

    # One stacked matmul covers fc2, both graph matmuls (+/-Wa folded into the
    # composite bias) and the decoder fc1 pre-activation.
    s = (jnp.dot(ms_ref[...], h1, preferred_element_type=jnp.float32)
         + cs_ref[...])                                     # (4d, tn)

    # rows [0 : 3d) are x_enc / logits / mat_z -- store directly (8-row aligned)
    out_ref[0:3 * d, :] = s[0:3 * d, :]

    # decoder: relu + out_fc2 on the pre-H3 rows
    h3 = jnp.maximum(s[3 * d:4 * d, :], 0.0)
    out_ref[3 * d:4 * d, :] = (
        jnp.dot(w4_ref[...], h3, preferred_element_type=jnp.float32)
        + b4_ref[...])


# ------------------------------ pallas_call glue ---------------------------- #

def _const_spec(shape):
    # Small weight / bias / composite blocks, resident across all grid steps.
    return pl.BlockSpec(shape, lambda i: (0, 0))


def _run_fused(xt, w1, b1, m_stack, c_stack, w4, b4, *, num_tiles):
    d, n = xt.shape
    assert n % num_tiles == 0
    tn = n // num_tiles
    in_spec = pl.BlockSpec((d, tn), lambda i: (0, i))
    out_spec = pl.BlockSpec((4 * d, tn), lambda i: (0, i))
    return pl.pallas_call(
        daggnn_fused_kernel,
        out_shape=jax.ShapeDtypeStruct((4 * d, n), jnp.float32),
        grid_spec=pltpu.PrefetchScalarGridSpec(
            num_scalar_prefetch=0,
            grid=(num_tiles,),
            in_specs=[in_spec,
                      _const_spec((d, d)), _const_spec((d, 1)),        # fc1
                      _const_spec((4 * d, d)), _const_spec((4 * d, 1)),  # stacked
                      _const_spec((d, d)), _const_spec((d, 1))],       # out_fc2
            out_specs=out_spec),
        compiler_params=pltpu.CompilerParams(
            dimension_semantics=("parallel",)),
    )(xt, w1, b1, m_stack, c_stack, w4, b4)


def _pick_num_tiles(n):
    """1 full-extent lane tile on single-TC chips (v5e/v6e); 2 parallel
    128-lane tiles only on v7x (2 TensorCores / chip).  Falls back to 1 if the
    device kind cannot be determined (the safe, overhead-free choice)."""
    if n % 256 != 0:
        return 1
    try:
        kind = jax.devices()[0].device_kind.lower()
    except Exception:
        return 1
    return 2 if "v7" in kind else 1


@functools.partial(jax.jit, static_argnames=("num_tiles",))
def _enc_dec_impl(x, params, *, num_tiles):
    b, d, xd = x.shape
    assert xd == d, "module uses n_xdims == n_out == data_variable_size"
    n = b * d

    f32 = lambda a: jnp.asarray(a, jnp.float32)
    col = lambda v: f32(v).reshape(d, 1)

    xt = f32(x).reshape(n, d).T                      # lane-transposed (d, n)

    adj_a = f32(params["adj_A"])
    adj_a1 = jnp.sinh(3.0 * adj_a)                   # encoder's origin_A
    eye = jnp.eye(d, dtype=jnp.float32)
    # Transposed-layout adjacency factors (transposed ONCE, outside the grid):
    #   Aft = (I - A1^T)^T = I - A1        (preprocess_adj_new, transposed)
    #   Ait = inv(I - A1^T)^T              (preprocess_adj_new1, transposed)
    aft = eye - adj_a1
    # TODO(synk): the matrix inverse (preprocess_adj_new1) has no clean Pallas
    # TPU primitive; the (d, d) inverse is done once in plain JAX float32 (the
    # PyTorch module keeps adj_A/Wa in float64).
    ait = jnp.linalg.inv(eye - adj_a1.T).T

    w1, b1 = f32(params["fc1_w"]), col(params["fc1_b"])
    w2, b2 = f32(params["fc2_w"]), col(params["fc2_b"])
    w3, b3 = f32(params["out_fc1_w"]), col(params["out_fc1_b"])
    w4, b4 = f32(params["out_fc2_w"]), col(params["out_fc2_b"])
    wa = col(params["Wa"])

    # Composite affine maps of h1 (everything between the two ReLUs folded):
    #   x_enc  = W2 @ h1 + b2
    #   logits = Aft @ (x_enc + Wa) - Wa
    #   mat_z  = Ait @ (logits + Wa) - Wa
    #   preH3  = W3 @ mat_z + b3
    m_log, c_log = aft @ w2, aft @ (b2 + wa) - wa
    m_mz, c_mz = ait @ m_log, ait @ (c_log + wa) - wa
    m_p3, c_p3 = w3 @ m_mz, w3 @ c_mz + b3
    m_stack = jnp.concatenate([w2, m_log, m_mz, m_p3], axis=0)      # (4d, d)
    c_stack = jnp.concatenate([b2, c_log, c_mz, c_p3], axis=0)      # (4d, 1)

    stacked = _run_fused(xt, w1, b1, m_stack, c_stack, w4, b4,
                         num_tiles=num_tiles)                       # (4d, n)

    # ONE transpose back to the module's (B, d, d) layout for all 4 tensors
    # (instead of four separate transpose+reshape dispatches).
    outs = jnp.transpose(stacked.reshape(4, d, n), (0, 2, 1)).reshape(4, b, d, d)
    x_enc, logits, mat_z, out = outs[0], outs[1], outs[2], outs[3]
    return (x_enc,      # encoder x
            logits,     # encoder logits (decoder input_z)
            adj_a1,     # origin_A
            mat_z,      # decoder mat_z
            out)        # decoder out (reconstruction)


def dag_gnn_enc_dec(x, params):
    """Full DAG_GNN enc -> dec pipeline (the module's real forward path)."""
    num_tiles = _pick_num_tiles(x.shape[0] * x.shape[1])
    return _enc_dec_impl(x, params, num_tiles=num_tiles)


# ----------------------------- pure-JAX reference --------------------------- #

def _reference(x, params):
    """Spec-faithful reference: activations on the LEFT of both graph matmuls
    (feature-axis contraction), exactly as the PyTorch module writes it."""
    d = x.shape[1]
    x = x.astype(jnp.float32)
    adj_a = params["adj_A"].astype(jnp.float32)
    adj_a1 = jnp.sinh(3.0 * adj_a)
    eye = jnp.eye(d, dtype=jnp.float32)
    adj_aforz = eye - adj_a1.T                     # preprocess_adj_new
    adj_inv = jnp.linalg.inv(eye - adj_a1.T)       # preprocess_adj_new1
    wa = params["Wa"].astype(jnp.float32)

    h1 = jax.nn.relu(x @ params["fc1_w"].T + params["fc1_b"])
    x_enc = h1 @ params["fc2_w"].T + params["fc2_b"]
    logits = (x_enc + wa) @ adj_aforz - wa

    mat_z = (logits + wa) @ adj_inv - wa
    h3 = jax.nn.relu(mat_z @ params["out_fc1_w"].T + params["out_fc1_b"])
    out = h3 @ params["out_fc2_w"].T + params["out_fc2_b"]
    return x_enc, logits, adj_a1, mat_z, out


# ----------------------------------- main ----------------------------------- #

if __name__ == "__main__":
    dim = 16      # n_in = n_xdims = n_hid = n_out = data_variable_size
    batch = 16    # small synthetic batch (module default batch_size is 256)

    key = jax.random.PRNGKey(0)
    ka, kw, k1, kb1, k2, k3, k4, kx = jax.random.split(key, 8)
    xavier_std = (2.0 / (dim + dim)) ** 0.5   # xavier_normal_ for square Linear

    params = {
        # DAG_GNN initializes adj_A to zeros; use a small nonzero matrix here so
        # the graph-matmul / inverse path is actually exercised (and a nonzero
        # Wa to exercise the folded +/-Wa bias algebra).
        "adj_A": 0.05 * jax.random.normal(ka, (dim, dim), jnp.float32),
        "Wa": 0.1 * jax.random.normal(kw, (dim,), jnp.float32),
        # encoder Linear: xavier_normal weights; fc1 bias nonzero for coverage.
        "fc1_w": xavier_std * jax.random.normal(k1, (dim, dim), jnp.float32),
        "fc1_b": 0.1 * jax.random.normal(kb1, (dim,), jnp.float32),
        "fc2_w": xavier_std * jax.random.normal(k2, (dim, dim), jnp.float32),
        "fc2_b": jnp.zeros((dim,), jnp.float32),
        # decoder Linear: xavier_normal weights; biases filled with 0.0 (spec).
        "out_fc1_w": xavier_std * jax.random.normal(k3, (dim, dim), jnp.float32),
        "out_fc1_b": jnp.zeros((dim,), jnp.float32),
        "out_fc2_w": xavier_std * jax.random.normal(k4, (dim, dim), jnp.float32),
        "out_fc2_b": jnp.zeros((dim,), jnp.float32),
    }

    x = jax.random.normal(kx, (batch, dim, dim), jnp.float32)

    outs = jax.block_until_ready(dag_gnn_enc_dec(x, params))

    refs = _reference(x, params)
    for got, want in zip(outs, refs):
        assert got.shape == want.shape, (got.shape, want.shape)
        assert bool(jnp.allclose(got, want, atol=1e-3, rtol=1e-3)), \
            "mismatch vs reference"

    print("KERNEL_OK")
</pallas_src>

<mosaic_0001>
module attributes {stable_mosaic.version = 11 : i64} {
  func.func @daggnn_fused_kernel(%arg0: i32, %arg1: memref<16x256xf32, #tpu.memory_space<vmem>>, %arg2: memref<16x16xf32, #tpu.memory_space<vmem>>, %arg3: memref<16x1xf32, #tpu.memory_space<vmem>>, %arg4: memref<64x16xf32, #tpu.memory_space<vmem>>, %arg5: memref<64x1xf32, #tpu.memory_space<vmem>>, %arg6: memref<16x16xf32, #tpu.memory_space<vmem>>, %arg7: memref<16x1xf32, #tpu.memory_space<vmem>>, %arg8: memref<64x256xf32, #tpu.memory_space<vmem>>) attributes {dimension_semantics = [#tpu.dimension_semantics<parallel>], iteration_bounds = array<i64: 1>, scalar_prefetch = 0 : i64, scratch_operands = 0 : i64, tpu.core_type = #tpu.core_type<tc>, window_params = [{transform_indices = @transform_0, window_bounds = array<i64: 16, 256>}, {pipeline_mode = #tpu.pipeline_mode<synchronous>, transform_indices = @transform_1, window_bounds = array<i64: 16, 16>}, {pipeline_mode = #tpu.pipeline_mode<synchronous>, transform_indices = @transform_2, window_bounds = array<i64: 16, 1>}, {pipeline_mode = #tpu.pipeline_mode<synchronous>, transform_indices = @transform_3, window_bounds = array<i64: 64, 16>}, {pipeline_mode = #tpu.pipeline_mode<synchronous>, transform_indices = @transform_4, window_bounds = array<i64: 64, 1>}, {pipeline_mode = #tpu.pipeline_mode<synchronous>, transform_indices = @transform_5, window_bounds = array<i64: 16, 16>}, {pipeline_mode = #tpu.pipeline_mode<synchronous>, transform_indices = @transform_6, window_bounds = array<i64: 16, 1>}, {transform_indices = @transform_7, window_bounds = array<i64: 64, 256>}]} {
    %c0 = arith.constant 0 : index
    %c0_0 = arith.constant 0 : index
    %0 = vector.load %arg2[%c0, %c0_0] : memref<16x16xf32, #tpu.memory_space<vmem>>, vector<16x16xf32>
    %c0_1 = arith.constant 0 : index
    %c0_2 = arith.constant 0 : index
    %1 = vector.load %arg1[%c0_1, %c0_2] : memref<16x256xf32, #tpu.memory_space<vmem>>, vector<16x256xf32>
    %cst = arith.constant dense<0.000000e+00> : vector<16x256xf32>
    %2 = tpu.matmul %0, %1, %cst {dimension_numbers = #tpu.dot_dimension_numbers<[1], [0], [0], [1], [0, 0, 1, 1], [], []>} : vector<16x16xf32>, vector<16x256xf32>, vector<16x256xf32> -> vector<16x256xf32>
    %c0_3 = arith.constant 0 : index
    %c0_4 = arith.constant 0 : index
    %3 = vector.load %arg3[%c0_3, %c0_4] : memref<16x1xf32, #tpu.memory_space<vmem>>, vector<16x1xf32>
    %4 = vector.broadcast %3 : vector<16x1xf32> to vector<16x256xf32>
    %5 = arith.addf %2, %4 : vector<16x256xf32>
    %cst_5 = arith.constant 0.000000e+00 : f32
    %6 = vector.broadcast %cst_5 : f32 to vector<16x256xf32>
    %7 = arith.maximumf %5, %6 : vector<16x256xf32>
    %c0_6 = arith.constant 0 : index
    %c0_7 = arith.constant 0 : index
    %8 = vector.load %arg4[%c0_6, %c0_7] : memref<64x16xf32, #tpu.memory_space<vmem>>, vector<64x16xf32>
    %cst_8 = arith.constant dense<0.000000e+00> : vector<64x256xf32>
    %9 = tpu.matmul %8, %7, %cst_8 {dimension_numbers = #tpu.dot_dimension_numbers<[1], [0], [0], [1], [0, 0, 1, 1], [], []>} : vector<64x16xf32>, vector<16x256xf32>, vector<64x256xf32> -> vector<64x256xf32>
    %c0_9 = arith.constant 0 : index
    %c0_10 = arith.constant 0 : index
    %10 = vector.load %arg5[%c0_9, %c0_10] : memref<64x1xf32, #tpu.memory_space<vmem>>, vector<64x1xf32>
    %11 = vector.broadcast %10 : vector<64x1xf32> to vector<64x256xf32>
    %12 = arith.addf %9, %11 : vector<64x256xf32>
    %13 = vector.extract_strided_slice %12 {offsets = [0, 0], sizes = [48, 256], strides = [1, 1]} : vector<64x256xf32> to vector<48x256xf32>
    %c0_11 = arith.constant 0 : index
    %c0_12 = arith.constant 0 : index
    %14 = vector.load %arg8[%c0_11, %c0_12] : memref<64x256xf32, #tpu.memory_space<vmem>>, vector<48x256xf32>
    tpu.vector_store %arg8[%c0_11, %c0_12], %13 {strides = array<i32>} : memref<64x256xf32, #tpu.memory_space<vmem>>, vector<48x256xf32>,
    %15 = vector.extract_strided_slice %12 {offsets = [48, 0], sizes = [16, 256], strides = [1, 1]} : vector<64x256xf32> to vector<16x256xf32>
    %cst_13 = arith.constant 0.000000e+00 : f32
    %16 = vector.broadcast %cst_13 : f32 to vector<16x256xf32>
    %17 = arith.maximumf %15, %16 : vector<16x256xf32>
    %c0_14 = arith.constant 0 : index
    %c0_15 = arith.constant 0 : index
    %18 = vector.load %arg6[%c0_14, %c0_15] : memref<16x16xf32, #tpu.memory_space<vmem>>, vector<16x16xf32>
    %cst_16 = arith.constant dense<0.000000e+00> : vector<16x256xf32>
    %19 = tpu.matmul %18, %17, %cst_16 {dimension_numbers = #tpu.dot_dimension_numbers<[1], [0], [0], [1], [0, 0, 1, 1], [], []>} : vector<16x16xf32>, vector<16x256xf32>, vector<16x256xf32> -> vector<16x256xf32>
    %c0_17 = arith.constant 0 : index
    %c0_18 = arith.constant 0 : index
    %20 = vector.load %arg7[%c0_17, %c0_18] : memref<16x1xf32, #tpu.memory_space<vmem>>, vector<16x1xf32>
    %21 = vector.broadcast %20 : vector<16x1xf32> to vector<16x256xf32>
    %22 = arith.addf %19, %21 : vector<16x256xf32>
    %c48 = arith.constant 48 : index
    %c0_19 = arith.constant 0 : index
    %23 = vector.load %arg8[%c48, %c0_19] : memref<64x256xf32, #tpu.memory_space<vmem>>, vector<16x256xf32>
    tpu.vector_store %arg8[%c48, %c0_19], %22 {strides = array<i32>} : memref<64x256xf32, #tpu.memory_space<vmem>>, vector<16x256xf32>,
    return
  }
  func.func @transform_0(%arg0: i32) -> (i32, i32) {
    %c0_i32 = arith.constant 0 : i32
    %c0_i32_0 = arith.constant 0 : i32
    return %c0_i32, %arg0 : i32, i32
  }
  func.func @transform_1(%arg0: i32) -> (i32, i32) {
    %c0_i32 = arith.constant 0 : i32
    %c0_i32_0 = arith.constant 0 : i32
    %c0_i32_1 = arith.constant 0 : i32
    return %c0_i32, %c0_i32_0 : i32, i32
  }
  func.func @transform_2(%arg0: i32) -> (i32, i32) {
    %c0_i32 = arith.constant 0 : i32
    %c0_i32_0 = arith.constant 0 : i32
    %c0_i32_1 = arith.constant 0 : i32
    return %c0_i32, %c0_i32_0 : i32, i32
  }
  func.func @transform_3(%arg0: i32) -> (i32, i32) {
    %c0_i32 = arith.constant 0 : i32
    %c0_i32_0 = arith.constant 0 : i32
    %c0_i32_1 = arith.constant 0 : i32
    return %c0_i32, %c0_i32_0 : i32, i32
  }
  func.func @transform_4(%arg0: i32) -> (i32, i32) {
    %c0_i32 = arith.constant 0 : i32
    %c0_i32_0 = arith.constant 0 : i32
    %c0_i32_1 = arith.constant 0 : i32
    return %c0_i32, %c0_i32_0 : i32, i32
  }
  func.func @transform_5(%arg0: i32) -> (i32, i32) {
    %c0_i32 = arith.constant 0 : i32
    %c0_i32_0 = arith.constant 0 : i32
    %c0_i32_1 = arith.constant 0 : i32
    return %c0_i32, %c0_i32_0 : i32, i32
  }
  func.func @transform_6(%arg0: i32) -> (i32, i32) {
    %c0_i32 = arith.constant 0 : i32
    %c0_i32_0 = arith.constant 0 : i32
    %c0_i32_1 = arith.constant 0 : i32
    return %c0_i32, %c0_i32_0 : i32, i32
  }
  func.func @transform_7(%arg0: i32) -> (i32, i32) {
    %c0_i32 = arith.constant 0 : i32
    %c0_i32_0 = arith.constant 0 : i32
    return %c0_i32, %arg0 : i32, i32
  }
}

</mosaic_0001>

<bundles_post_ra>
// kernel: custom-call.11
= control target key start
LH: loop header
LB: loop body
LE: loop exit
PB: predicated region body
PF: predicated region fallthrough
CT: control target
= control target key end

     0   :  { %5 = vsyncpa [#allocation4], 0  ;;  %s873_s0 = inlined_call_operand.vmem [shape: f32[16,16], index: 0, kind: input, shape index: {}]   ;;  %s874_s1 = inlined_call_operand.vmem [shape: f32[16,16], index: 1, kind: output, shape index: {0}]   ;;  %s875_s2 = inlined_call_operand.hbm [shape: s32[16], index: 2, kind: output, shape index: {1}]   ;;  %s876_s3 = inlined_call_operand.vmem [shape: s32[16], index: 3, kind: output, shape index: {2}]  }
   0x1   :  { %s19_s14 = scalar_lea.vmem %s873_s0, 8 }
   0x2   :  { %p461_p0 = scmp.gt.s32.totalorder %s873_s0, %s19_s14 }
   0x3   :  { %s752_s17 = smov (!%p461_p0), [#allocation0]   ;;  %s756_s20 = smov (!%p461_p0), %s873_s0  }
   0x4   :  { %462 = sbr.rel (%p461_p0) target bundleno = 17 (0x11), region = 157 }
   0x9 LB: > { %v53_v0 = vld [vmem:[%s758_s20] sm:$0xff]  ;;  %s55_s20 = scalar_lea.vmem %s758_s20, 8   ;;  %s758_s20 = sphi %s756_s20, %s55_s20   ;;  %s754_s17 = sphi %s752_s17, %s56_s17  }
   0xa   : > { %54 = vst [vmem:[%s754_s17] sm:$0xff] %v53_v0  ;;  %s56_s17 = scalar_lea.vmem %s754_s17, 8   ;;  %p50_p1 = scmp.gt.s32.totalorder %s55_s20, %s19_s14 }
   0xc   :  { %52 = sbr.rel (!%p50_p1) target bundleno = 9 (0x9), region = 163 }
  0x11 PF:  { %v69_v1 = vld [vmem:[#allocation0] sm:$0xff]  ;;  %v73_v2 = vld [vmem:[#allocation0 + $0x8] sm:$0xff]  ;;  %v76_v3 = vlaneseq  ;;  %v776_v4 = vmov 0   ;;  %s760_s0 = smov 0  }
  0x12   :  { %70 = vst [vmem:[#allocation1] sm:$0xff] %v69_v1  ;;  %74 = vst [vmem:[#allocation1 + $0x8] sm:$0xff] %v73_v2 }
  0x13   :  { %75 = vst [vmem:[#allocation2] sm:$0x1] %v776_v4  ;;  %v808_v5 = vshrl.u32 %v76_v3, 7 }
  0x14 LB: > { %s519_s21 = sshll.u32 %s762_s0, 3  ;;  %s84_s0 = sadd.s32 1, %s762_s0   ;;  %s762_s0 = sphi %s760_s0, %s84_s0  }
  0x15   : > { %v88_v6 = vstv %s519_s21  ;;  %s86_s22 = scalar_lea.vmem [#allocation7], %s519_s21  ;;  %p81_p2 = scmp.ge.s32.totalorder %s84_s0, 2  }
  0x16   : > { %v89_v7 = vadd.s32 %v88_v6, %v808_v5  ;;  %s811_s23 = smov (%p81_p2), 0  }
  0x17   :  { %83 = sbr.rel (!%p81_p2) target bundleno = 20 (0x14), region = 174 }
  0x18   : > { %90 = vst [vmem:[%s86_s22] sm:$0xff] %v89_v7 }
  0x1c LB: > { %v101_v8 = vld [vmem:[#allocation1] sm:$0xff]  ;;  %v113_v9 = vld [vmem:[#allocation1 + $0x8] sm:$0xff]  ;;  %v817_v10 = vadd.s32 8, %v808_v5  ;;  %v820_v12 = vstv %s766_s23  ;;  %s159_s24 = ssub.s32 128, %s766_s23  ;;  %v165_v45 = vand.u32 127, %v76_v3  ;;  %s171_s25 = scalar_lea.vmem [#allocation1], %s766_s23  ;;  %s766_s23 = sphi %s811_s23, %s96_s23  }
  0x1d   : > { %v102_v11 = vand.u32 2147483647, %v101_v8  ;;  %v114_v13 = vand.u32 2147483647, %v113_v9  ;;  %vm105_vm0 = vcmp.ge.s32.totalorder %v808_v5, %v820_v12  ;;  %v168_v48 = vld [vmem:[#allocation2] ss:$0 sm:$0xff] }
  0x1e   : > { %vm117_vm3 = vcmp.ge.s32.totalorder %v817_v10, %v820_v12  ;;  %vm189_vm13 = vcmp.gt.s32.totalorder %v165_v45, %v820_v12  ;;  %vm212_vm14 = vcmp.gt.s32.totalorder %v817_v10, %v820_v12  ;;  %vm166_vm15 = vcmp.eq.s32.totalorder %v165_v45, %v820_v12  ;;  %v173_v49 = vld [vmem:[%s171_s25] ss:$0 sm:$0xff]  ;;  %s177_s27 = scalar_lea.vmem [#allocation7], %s766_s23  ;;  %s96_s23 = sadd.s32 1, %s766_s23  }
  0x1f   : > { %vm521_vm1 = vcmp.gt.f32.partialorder %v102_v11, -inf  ;;  %v179_v50 = vld [vmem:[%s177_s27] ss:$0 sm:$0xff]  ;;  %p93_p3 = scmp.ge.s32.totalorder %s96_s23, 16  }
  0x20   : > { %vm109_vm2 = vmand %vm105_vm0, %vm521_vm1  ;;  %s768_s5 = smov (%p93_p3), %s874_s1   ;;  %s772_s6 = smov (%p93_p3), [#allocation1]  }
  0x21   : > { %v110_v14 = vsel %vm109_vm2, %v808_v5, %v820_v12  ;;  %v111_v15 = vsel %vm109_vm2, %v102_v11, -inf  ;;  %vm840_vm0 = vmand %vm212_vm14, %vm166_vm15  ;;  %vm197_vm2 = vcmp.gt.s32.totalorder %v808_v5, %v820_v12 }
  0x22   : > { %vm120_vm4 = vcmp.lt.f32.partialorder %v111_v15, %v114_v13 }
  0x23   : > { %vm121_vm5 = vmand %vm117_vm3, %vm120_vm4 }
  0x24   : > { %v122_v16 = vsel %vm121_vm5, %v817_v10, %v110_v14  ;;  %v123_v17 = vsel %vm121_vm5, %v114_v13, %v111_v15  ;;  %vm201_vm4 = vmand %vm197_vm2, %vm166_vm15 }
  0x25   : > { %v124_v18 = vrot.slane %v123_v17, 1  ;;  %v125_v19 = vrot.slane %v122_v16, 1 }
  0x27   : > { %vm126_vm6 = vcmp.ge.f32.partialorder %v124_v18, %v123_v17  ;;  %v129_v20 = vrot.slane %v124_v18, 1  ;;  %v130_v21 = vrot.slane %v125_v19, 1 }
  0x28   : > { %v127_v22 = vsel %vm126_vm6, %v124_v18, %v123_v17  ;;  %v128_v23 = vsel %vm126_vm6, %v125_v19, %v122_v16 }
  0x29   : > { %vm131_vm7 = vcmp.ge.f32.partialorder %v129_v20, %v127_v22  ;;  %v134_v24 = vrot.slane %v129_v20, 1  ;;  %v135_v25 = vrot.slane %v130_v21, 1 }
  0x2a   : > { %v132_v26 = vsel %vm131_vm7, %v129_v20, %v127_v22  ;;  %v133_v27 = vsel %vm131_vm7, %v130_v21, %v128_v23 }
  0x2b   : > { %vm136_vm8 = vcmp.ge.f32.partialorder %v134_v24, %v132_v26  ;;  %v139_v28 = vrot.slane %v134_v24, 1  ;;  %v140_v29 = vrot.slane %v135_v25, 1 }
  0x2c   : > { %v137_v30 = vsel %vm136_vm8, %v134_v24, %v132_v26  ;;  %v138_v31 = vsel %vm136_vm8, %v135_v25, %v133_v27 }
  0x2d   : > { %vm141_vm9 = vcmp.ge.f32.partialorder %v139_v28, %v137_v30  ;;  %v144_v32 = vrot.slane %v139_v28, 1  ;;  %v145_v33 = vrot.slane %v140_v29, 1 }
  0x2e   : > { %v142_v34 = vsel %vm141_vm9, %v139_v28, %v137_v30  ;;  %v143_v35 = vsel %vm141_vm9, %v140_v29, %v138_v31 }
  0x2f   : > { %vm146_vm10 = vcmp.ge.f32.partialorder %v144_v32, %v142_v34  ;;  %v149_v36 = vrot.slane %v144_v32, 1  ;;  %v150_v37 = vrot.slane %v145_v33, 1 }
  0x30   : > { %v147_v38 = vsel %vm146_vm10, %v144_v32, %v142_v34  ;;  %v148_v39 = vsel %vm146_vm10, %v145_v33, %v143_v35 }
  0x31   : > { %vm151_vm11 = vcmp.ge.f32.partialorder %v149_v36, %v147_v38  ;;  %v154_v40 = vrot.slane %v149_v36, 1  ;;  %v155_v41 = vrot.slane %v150_v37, 1 }
  0x32   : > { %v152_v42 = vsel %vm151_vm11, %v149_v36, %v147_v38  ;;  %v153_v43 = vsel %vm151_vm11, %v150_v37, %v148_v39 }
  0x33   : > { %vm156_vm12 = vcmp.ge.f32.partialorder %v154_v40, %v152_v42 }
  0x34   : > { %v158_v44 = vsel %vm156_vm12, %v155_v41, %v153_v43 }
  0x35   : > { %160 = vrot.lane.b32.xlu0 %v158_v44, %s159_s24 }
  0xa7   : > { %v161_v47 = vpop.permute.xlu0 %160 }
  0xa8   : > { %529 = vpush %v161_v47 }
  0xd9   : > { %s530_s26 = spop %529 }
  0xda   : > { %v167_v51 = vstv %s530_s26  ;;  %s172_s28 = scalar_lea.vmem [#allocation1], %s530_s26  ;;  %s178_s29 = scalar_lea.vmem [#allocation7], %s530_s26 }
  0xdb   : > { %v169_v52 = vsel %vm166_vm15, %v167_v51, %v168_v48  ;;  %v174_v53 = vld [vmem:[%s172_s28] ss:$0 sm:$0xff] }
  0xdc   : > { %v180_v54 = vld [vmem:[%s178_s29] ss:$0 sm:$0xff]  ;;  %170 = vst [vmem:[#allocation2] sm:$0x1] %v169_v52  ;;  %175 = vst [vmem:[%s172_s28] sm:$0x1] %v173_v49  ;;  %vm183_vm1 = vcmp.ne.f32.partialorder %v174_v53, 0.0 }
  0xdd   : > { %181 = vst [vmem:[%s178_s29] sm:$0x1] %v179_v50  ;;  %176 = vst [vmem:[%s171_s25] sm:$0x1] %v174_v53  ;;  %v190_v2 = vsel %vm189_vm13, %v174_v53, 0.0 }
  0xde   : > { %182 = vst [vmem:[%s177_s27] sm:$0x1] %v180_v54  ;;  %vm184_vm3 = vmand %vm166_vm15, %vm183_vm1 }
  0xdf   : > { %v185_v55 = vsel %vm184_vm3, %v174_v53, 1.0 }
  0xe0   : > { %v213_v56 = vsel %vm212_vm14, %v185_v55, 1.0  ;;  %v198_v57 = vsel %vm197_vm2, %v185_v55, 1.0 }
  0xe1   : > { %662 = vrcp.f32 %v213_v56 }
  0xe2   : > { %664 = vrcp.f32 %v198_v57 }
  0xe3   :  { %v277_v12 = vld [vmem:[#allocation2] sm:$0x1] (%p93_p3) }
  0xe4   : > { %v209_v59 = vld [vmem:[#allocation1 + $0x8] sm:$0xff]  ;;  %v194_v62 = vld [vmem:[#allocation1] sm:$0xff]  ;;  %280 = vst [vmem:[#allocation3] sm:$0x1] (%p93_p3), %v277_v12 }
  0xe5   :  { %v223_v11 = vld [vmem:[#allocation7] sm:$0xff] (%p93_p3)  ;;  %v225_v13 = vld [vmem:[#allocation7 + $0x8] sm:$0xff] (%p93_p3) }
  0xee   : > { %v663_v58 = vpop.eup %662 }
  0xef   : > { %v665_v60 = vpop.eup %664  ;;  %v215_v61 = vmul.f32 %v663_v58, %v209_v59 }
  0xf0   : > { %v200_v63 = vmul.f32 %v665_v60, %v194_v62 }
  0xf1   : > { %v217_v0 = vsel %vm840_vm0, %v215_v61, 0.0 }
  0xf2   : > { %218 = vadd.xlane.f32.xlu1 %v217_v0  ;;  %v202_v1 = vsel %vm201_vm4, %v200_v63, 0.0 }
  0xf3   : > { %203 = vadd.xlane.f32.xlu0 %v202_v1 }
 0x120   :  { %240 = vxpose.xlu0.b32.start [1/2] (short) (narrow) (%p93_p3), %v223_v11, 8 }
 0x124   :  { %241 = vxpose.xlu0.b32.end [2/2] (short) (narrow) (%p93_p3), %v225_v13, 8 }
 0x17b   : > { %v219_v4 = vpop.xlane.xlu1 %218 }
 0x17c   : > { %v220_v6 = vmul.f32 %v219_v4, %v190_v2  ;;  %v204_v7 = vpop.xlane.xlu0 %203 }
 0x17d   : > { %v205_v8 = vmul.f32 %v204_v7, %v190_v2  ;;  %95 = sbr.rel (!%p93_p3) target bundleno = 28 (0x1c), region = 185 }
 0x17e   : > { %v221_v9 = vsub.f32 %v215_v61, %v220_v6 }
 0x17f   : > { %v206_v10 = vsub.f32 %v200_v63, %v205_v8 }
 0x180   : > { %222 = vst [vmem:[#allocation1 + $0x8] sm:$0xff] %v221_v9 }
 0x181   : > { %207 = vst [vmem:[#allocation1] sm:$0xff] %v206_v10 }
 0x19c   :  { %v256_v14 = vpop.trf.xlu0 }
 0x19d   :  { %272 = vst [vmem:[#allocation5] sm:$0x1] %v256_v14 }
 0x1a4   :  { %v285_v15 = vld [vmem:[#allocation5] sm:$0x1] }
 0x1a5   :  { %288 = vst [vmem:[#allocation6] sm:$0x1] %v285_v15 }
 0x1a6 LB: > { %v336_v16 = vld [vmem:[%s774_s6] sm:$0xff]  ;;  %s338_s6 = scalar_lea.vmem %s774_s6, 8   ;;  %s774_s6 = sphi %s772_s6, %s338_s6   ;;  %s770_s5 = sphi %s768_s5, %s339_s5  }
 0x1a7   : > { %337 = vst [vmem:[%s770_s5] sm:$0xff] %v336_v16  ;;  %s339_s5 = scalar_lea.vmem %s770_s5, 8   ;;  %p333_p4 = scmp.gt.s32.totalorder %s338_s6, [#allocation1 + $0x8] }
 0x1a8   :  { %s777_s7 = smov (%p333_p4), [#allocation3]  }
 0x1a9   :  { %335 = sbr.rel (!%p333_p4) target bundleno = 422 (0x1a6), region = 207  ;;  %s357_s8 = sshll.u32 (%p333_p4), %s777_s7, 4  ;;  %s358_s8 = int_to_ptr.vmem [resolvable:$true] %s357_s8 }
 0x1aa   :  { %s666_s1 = scalar_lea.vmem (%p333_p4), %s358_s8, 16  ;;  %s670_s11 = scalar_lea.vmem (%p333_p4), %s358_s8, 32 }
 0x1ab   :  { %p667_p5 = scmp.ne.s32.totalorder (%p333_p4), %s358_s8, %s666_s1  ;;  %p671_p6 = scmp.lt.s32.totalorder (%p333_p4), %s358_s8, %s358_s8 }
 0x1ac   :  { %v424_v3 = vld [vmem:[#allocation6] sm:$0x1] (%p333_p4)  ;;  %p672_p7 = scmp.lt.s32.totalorder (%p333_p4), %s670_s11, %s666_s1 }
 0x1ad   :  { %425 = vst [vmem:[%s876_s3] sm:$0x1] (%p333_p4), %v424_v3 }
 0x1ae   :  { %p673_p8 = por %p672_p7, %p671_p6 }
 0x1b0   :  { %p674_p9 = pnand %p673_p8, %p667_p5 }
 0x1b2   :  { %677 = shalt.err (!%p674_p9)
}
 0x1b3   :  { %360 = dma.vmem_to_hbm [thread:$0]  %s358_s8, 16, %s875_s2, [#allocation4]  }
 0x1b4   :  { %750 = dma.done.wait [#allocation4], 16  }
 0x1b5   :  { %751 = vsyncadd [#allocation4], 4294967280 }
 0x1b6   :  { %431 = vsyncpa [#allocation4], 1 }

// kernel: custom-call.13
= control target key start
LH: loop header
LB: loop body
LE: loop exit
PB: predicated region body
PF: predicated region fallthrough
CT: control target
= control target key end

     0   :  { %v39_v0 = vlaneseq  ;;  %v334_v9 = vmov -1.0   ;;  %v335_v53 = vmov 0.0   ;;  %s403_s0 = inlined_call_operand.vmem [shape: f32[1,16,16], index: 0, kind: input, shape index: {}]   ;;  %s404_s1 = inlined_call_operand.vmem [shape: f32[1,16,16], index: 1, kind: output, shape index: {}]  }
   0x1   :  { %v32_v1 = vld [vmem:[%s403_s0] sm:$0xff]  ;;  %v34_v36 = vld [vmem:[%s403_s0 + $0x8] sm:$0xff] }
   0x2   :  { %v349_v2 = vand.u32 127, %v39_v0  ;;  %v43_v3 = vshrl.u32 %v39_v0, 7 }
   0x4   :  { %vm45_vm0 = vcmp.eq.s32.totalorder %v43_v3, %v349_v2  ;;  %vm41_vm1 = vcmp.lt.s32.totalorder %v349_v2, 16  ;;  %vm50_vm2 = vcmp.ge.s32.totalorder %v43_v3, %v349_v2  ;;  %vm80_vm4 = vcmp.eq.s32.totalorder %v349_v2, 0 }
   0x5   :  { %v47_v4 = vsel %vm45_vm0, %v32_v1, 0.0  ;;  %vm51_vm3 = vmand %vm50_vm2, %vm41_vm1  ;;  %vm77_vm5 = vcmp.eq.s32.totalorder %v349_v2, %v43_v3  ;;  %v81_v10 = vsel %vm80_vm4, 1.0, %v334_v9  ;;  %vm95_vm6 = vcmp.eq.s32.totalorder %v349_v2, 1 }
   0x6   :  { %48 = vadd.xlane.f32.xlu0 %v47_v4  ;;  %v52_v6 = vsel %vm51_vm3, %v32_v1, 0.0  ;;  %v82_v11 = vsel %vm77_vm5, %v81_v10, 0.0  ;;  %vm105_vm7 = vcmp.eq.s32.totalorder %v349_v2, 2  ;;  %vm115_vm8 = vcmp.eq.s32.totalorder %v349_v2, 3 }
   0x7   :  { %vm125_vm9 = vcmp.eq.s32.totalorder %v349_v2, 4  ;;  %v60_v31 = vadd.s32 8, %v43_v3  ;;  %vm135_vm11 = vcmp.eq.s32.totalorder %v349_v2, 5  ;;  %vm145_vm14 = vcmp.eq.s32.totalorder %v349_v2, 6 }
   0x8   :  { %vm155_vm0 = vcmp.eq.s32.totalorder %v349_v2, 7  ;;  %vm179_vm2 = vcmp.eq.s32.totalorder %v349_v2, 9  ;;  %vm193_vm3 = vcmp.eq.s32.totalorder %v349_v2, 10  ;;  %vm207_vm4 = vcmp.eq.s32.totalorder %v349_v2, 11 }
   0x9   :  { %vm61_vm10 = vcmp.eq.s32.totalorder %v60_v31, %v349_v2  ;;  %vm66_vm12 = vcmp.ge.s32.totalorder %v60_v31, %v349_v2  ;;  %vm88_vm15 = vcmp.eq.s32.totalorder %v349_v2, %v60_v31  ;;  %vm221_vm5 = vcmp.eq.s32.totalorder %v349_v2, 12 }
   0xa   :  { %v63_v37 = vsel %vm61_vm10, %v34_v36, 0.0  ;;  %vm67_vm13 = vmand %vm66_vm12, %vm41_vm1  ;;  %v89_v54 = vsel %vm88_vm15, -1.0, %v335_v53  ;;  %vm165_vm1 = vcmp.eq.s32.totalorder %v349_v2, 8 }
   0xb   :  { %v68_v44 = vsel %vm67_vm13, %v34_v36, 0.0 }
  0x8f   :  { %v352_v5 = vpop.xlane.xlu0 %48 }
  0x90   :  { %330 = vrcp.f32 %v352_v5  ;;  %vm274_vm10 = vweird.f32 %v352_v5 }
  0x9d   :  { %v359_v7 = vpop.eup %330 }
  0x9e   :  { %v54_v8 = vmul.f32 %v359_v7, %v52_v6 }
  0xa0   :  { %55 = vst [vmem:[#allocation2] sm:$0xff] %v54_v8 }
  0xa7   :  { %v91_v12 = vld [vmem:[#allocation2 + $0x1] ss:$0 sm:$0xff]  ;;  %v101_v15 = vld [vmem:[#allocation2 + $0x2] ss:$0 sm:$0xff]  ;;  %v111_v20 = vld [vmem:[#allocation2 + $0x3] ss:$0 sm:$0xff] }
  0xa8   :  { %v92_v13 = vxor.u32 2147483648, %v91_v12  ;;  %v102_v17 = vxor.u32 2147483648, %v101_v15  ;;  %v112_v22 = vxor.u32 2147483648, %v111_v20  ;;  %v121_v25 = vld [vmem:[#allocation2 + $0x4] ss:$0 sm:$0xff] }
  0xa9   :  { %v122_v27 = vxor.u32 2147483648, %v121_v25  ;;  %v131_v30 = vld [vmem:[#allocation2 + $0x5] ss:$0 sm:$0xff]  ;;  %v141_v38 = vld [vmem:[#allocation2 + $0x6] ss:$0 sm:$0xff] }
  0xaa   :  { %v96_v14 = vmul.f32 %v92_v13, %v82_v11  ;;  %v132_v33 = vxor.u32 2147483648, %v131_v30  ;;  %v142_v40 = vxor.u32 2147483648, %v141_v38  ;;  %v151_v47 = vld [vmem:[#allocation2 + $0x7] ss:$0 sm:$0xff] }
  0xab   :  { %v152_v50 = vxor.u32 2147483648, %v151_v47 }
  0xac   :  { %97 = vadd.xlane.f32.xlu0 %v96_v14 }
 0x135   :  { %v98_v16 = vpop.xlane.xlu0 %97 }
 0x136   :  { %v99_v18 = vsel %vm95_vm6, %v98_v16, %v82_v11  ;;  %vm235_vm6 = vcmp.eq.s32.totalorder %v349_v2, 13 }
 0x137   :  { %v106_v19 = vmul.f32 %v102_v17, %v99_v18 }
 0x139   :  { %107 = vadd.xlane.f32.xlu1 %v106_v19 }
 0x1c2   :  { %v108_v21 = vpop.xlane.xlu1 %107 }
 0x1c3   :  { %v109_v23 = vsel %vm105_vm7, %v108_v21, %v99_v18  ;;  %vm249_vm7 = vcmp.eq.s32.totalorder %v349_v2, 14 }
 0x1c4   :  { %v116_v24 = vmul.f32 %v112_v22, %v109_v23 }
 0x1c6   :  { %117 = vadd.xlane.f32.xlu1 %v116_v24 }
 0x24f   :  { %v118_v26 = vpop.xlane.xlu1 %117 }
 0x250   :  { %v119_v28 = vsel %vm115_vm8, %v118_v26, %v109_v23  ;;  %vm263_vm8 = vcmp.eq.s32.totalorder %v349_v2, 15 }
 0x251   :  { %v126_v29 = vmul.f32 %v122_v27, %v119_v28 }
 0x253   :  { %127 = vadd.xlane.f32.xlu0 %v126_v29 }
 0x2dc   :  { %v128_v32 = vpop.xlane.xlu0 %127 }
 0x2dd   :  { %v129_v34 = vsel %vm125_vm9, %v128_v32, %v119_v28 }
 0x2de   :  { %v136_v35 = vmul.f32 %v132_v33, %v129_v34 }
 0x2e0   :  { %137 = vadd.xlane.f32.xlu1 %v136_v35 }
 0x2e4   :  { %64 = vadd.xlane.f32.xlu1 %v63_v37 }
 0x369   :  { %v138_v39 = vpop.xlane.xlu1 %137 }
 0x36a   :  { %v139_v41 = vsel %vm135_vm11, %v138_v39, %v129_v34 }
 0x36b   :  { %v146_v42 = vmul.f32 %v142_v40, %v139_v41 }
 0x36d   :  { %147 = vadd.xlane.f32.xlu0 %v146_v42  ;;  %v373_v43 = vpop.xlane.xlu1 %64 }
 0x36e   :  { %332 = vrcp.f32 %v373_v43  ;;  %vm279_vm9 = vweird.f32 %v373_v43 }
 0x37b   :  { %v379_v45 = vpop.eup %332 }
 0x37c   :  { %v70_v46 = vmul.f32 %v379_v45, %v68_v44 }
 0x37e   :  { %71 = vst [vmem:[#allocation2 + $0x8] sm:$0xff] %v70_v46 }
 0x385   :  { %v161_v48 = vld [vmem:[#allocation2 + $0x8] ss:$0 sm:$0xff]  ;;  %v175_v59 = vld [vmem:[#allocation2 + $0x9] ss:$0 sm:$0xff]  ;;  %v189_v4 = vld [vmem:[#allocation2 + $0xa] ss:$0 sm:$0xff] }
 0x386   :  { %v162_v51 = vxor.u32 2147483648, %v161_v48  ;;  %v176_v62 = vxor.u32 2147483648, %v175_v59  ;;  %v190_v9 = vxor.u32 2147483648, %v189_v4  ;;  %v203_v14 = vld [vmem:[#allocation2 + $0xb] ss:$0 sm:$0xff] }
 0x387   :  { %v204_v17 = vxor.u32 2147483648, %v203_v14  ;;  %v217_v22 = vld [vmem:[#allocation2 + $0xc] ss:$0 sm:$0xff]  ;;  %v231_v30 = vld [vmem:[#allocation2 + $0xd] ss:$0 sm:$0xff] }
 0x388   :  { %v170_v56 = vmul.f32 %v162_v51, %v89_v54  ;;  %v218_v25 = vxor.u32 2147483648, %v217_v22  ;;  %v232_v33 = vxor.u32 2147483648, %v231_v30  ;;  %v245_v38 = vld [vmem:[#allocation2 + $0xe] ss:$0 sm:$0xff]  ;;  %v259_v48 = vld [vmem:[#allocation2 + $0xf] ss:$0 sm:$0xff] }
 0x3f6   :  { %v148_v49 = vpop.xlane.xlu0 %147 }
 0x3f7   :  { %v149_v52 = vsel %vm145_vm14, %v148_v49, %v139_v41  ;;  %v246_v41 = vxor.u32 2147483648, %v245_v38 }
 0x3f8   :  { %v156_v55 = vmul.f32 %v152_v50, %v149_v52 }
 0x3fa   :  { %157 = vadd.xlane.f32.xlu0 %v156_v55 }
 0x3fe   :  { %171 = vadd.xlane.f32.xlu0 %v170_v56 }
 0x483   :  { %v158_v57 = vpop.xlane.xlu0 %157 }
 0x484   :  { %v159_v58 = vsel %vm155_vm0, %v158_v57, %v149_v52 }
 0x485   :  { %v166_v60 = vmul.f32 %v162_v51, %v159_v58  ;;  %v260_v51 = vxor.u32 2147483648, %v259_v48 }
 0x487   :  { %v172_v61 = vpop.xlane.xlu0 %171  ;;  %167 = vadd.xlane.f32.xlu1 %v166_v60 }
 0x488   :  { %v173_v63 = vsel %vm165_vm1, %v172_v61, %v89_v54 }
 0x489   :  { %v184_v0 = vmul.f32 %v176_v62, %v173_v63 }
 0x48b   :  { %185 = vadd.xlane.f32.xlu0 %v184_v0 }
 0x510   :  { %v168_v1 = vpop.xlane.xlu1 %167 }
 0x511   :  { %v169_v3 = vsel %vm165_vm1, %v168_v1, %v159_v58 }
 0x512   :  { %v180_v6 = vmul.f32 %v176_v62, %v169_v3 }
 0x514   :  { %v186_v8 = vpop.xlane.xlu0 %185  ;;  %181 = vadd.xlane.f32.xlu1 %v180_v6 }
 0x515   :  { %v187_v10 = vsel %vm179_vm2, %v186_v8, %v173_v63 }
 0x516   :  { %v198_v11 = vmul.f32 %v190_v9, %v187_v10 }
 0x518   :  { %199 = vadd.xlane.f32.xlu0 %v198_v11 }
 0x59d   :  { %v182_v12 = vpop.xlane.xlu1 %181 }
 0x59e   :  { %v183_v13 = vsel %vm179_vm2, %v182_v12, %v169_v3 }
 0x59f   :  { %v194_v15 = vmul.f32 %v190_v9, %v183_v13 }
 0x5a1   :  { %v200_v16 = vpop.xlane.xlu0 %199  ;;  %195 = vadd.xlane.f32.xlu1 %v194_v15 }
 0x5a2   :  { %v201_v18 = vsel %vm193_vm3, %v200_v16, %v187_v10 }
 0x5a3   :  { %v212_v19 = vmul.f32 %v204_v17, %v201_v18 }
 0x5a5   :  { %213 = vadd.xlane.f32.xlu0 %v212_v19 }
 0x62a   :  { %v196_v20 = vpop.xlane.xlu1 %195 }
 0x62b   :  { %v197_v21 = vsel %vm193_vm3, %v196_v20, %v183_v13 }
 0x62c   :  { %v208_v23 = vmul.f32 %v204_v17, %v197_v21 }
 0x62e   :  { %v214_v24 = vpop.xlane.xlu0 %213  ;;  %209 = vadd.xlane.f32.xlu1 %v208_v23 }
 0x62f   :  { %v215_v26 = vsel %vm207_vm4, %v214_v24, %v201_v18 }
 0x630   :  { %v226_v27 = vmul.f32 %v218_v25, %v215_v26 }
 0x632   :  { %227 = vadd.xlane.f32.xlu0 %v226_v27 }
 0x6b7   :  { %v210_v28 = vpop.xlane.xlu1 %209 }
 0x6b8   :  { %v211_v29 = vsel %vm207_vm4, %v210_v28, %v197_v21 }
 0x6b9   :  { %v222_v31 = vmul.f32 %v218_v25, %v211_v29 }
 0x6bb   :  { %v228_v32 = vpop.xlane.xlu0 %227  ;;  %223 = vadd.xlane.f32.xlu1 %v222_v31 }
 0x6bc   :  { %v229_v34 = vsel %vm221_vm5, %v228_v32, %v215_v26 }
 0x6bd   :  { %v240_v35 = vmul.f32 %v232_v33, %v229_v34 }
 0x6bf   :  { %241 = vadd.xlane.f32.xlu0 %v240_v35 }
 0x744   :  { %v224_v36 = vpop.xlane.xlu1 %223 }
 0x745   :  { %v225_v37 = vsel %vm221_vm5, %v224_v36, %v211_v29 }
 0x746   :  { %v236_v39 = vmul.f32 %v232_v33, %v225_v37 }
 0x748   :  { %v242_v40 = vpop.xlane.xlu0 %241  ;;  %237 = vadd.xlane.f32.xlu1 %v236_v39 }
 0x749   :  { %v243_v42 = vsel %vm235_vm6, %v242_v40, %v229_v34 }
 0x74a   :  { %v254_v44 = vmul.f32 %v246_v41, %v243_v42 }
 0x74c   :  { %255 = vadd.xlane.f32.xlu0 %v254_v44 }
 0x7d1   :  { %v238_v46 = vpop.xlane.xlu1 %237 }
 0x7d2   :  { %v239_v47 = vsel %vm235_vm6, %v238_v46, %v225_v37 }
 0x7d3   :  { %v250_v49 = vmul.f32 %v246_v41, %v239_v47 }
 0x7d5   :  { %v256_v50 = vpop.xlane.xlu0 %255  ;;  %251 = vadd.xlane.f32.xlu1 %v250_v49 }
 0x7d6   :  { %v257_v52 = vsel %vm249_vm7, %v256_v50, %v243_v42 }
 0x7d7   :  { %v268_v53 = vmul.f32 %v260_v51, %v257_v52 }
 0x7d9   :  { %269 = vadd.xlane.f32.xlu0 %v268_v53 }
 0x85e   :  { %v252_v54 = vpop.xlane.xlu1 %251 }
 0x85f   :  { %v253_v55 = vsel %vm249_vm7, %v252_v54, %v239_v47 }
 0x860   :  { %v264_v56 = vmul.f32 %v260_v51, %v253_v55 }
 0x862   :  { %v270_v57 = vpop.xlane.xlu0 %269  ;;  %265 = vadd.xlane.f32.xlu1 %v264_v56 }
 0x863   :  { %v271_v58 = vsel %vm263_vm8, %v270_v57, %v257_v52 }
 0x864   :  { %v278_v59 = vmul.f32 %v379_v45, %v271_v58 }
 0x866   :  { %v280_v60 = vsel %vm279_vm9, %v271_v58, %v278_v59 }
 0x867   :  { %316 = vst [vmem:[%s404_s1 + $0x8] sm:$0xff] %v280_v60 }
 0x8eb   :  { %v266_v61 = vpop.xlane.xlu1 %265 }
 0x8ec   :  { %v267_v62 = vsel %vm263_vm8, %v266_v61, %v253_v55 }
 0x8ed   :  { %v273_v63 = vmul.f32 %v359_v7, %v267_v62 }
 0x8ef   :  { %v275_v2 = vsel %vm274_vm10, %v267_v62, %v273_v63 }
 0x8f0   :  { %314 = vst [vmem:[%s404_s1] sm:$0xff] %v275_v2 }

// kernel: custom-call.12
= control target key start
LH: loop header
LB: loop body
LE: loop exit
PB: predicated region body
PF: predicated region fallthrough
CT: control target
= control target key end

     0   :  { %v39_v0 = vlaneseq  ;;  %v333_v10 = vmov -1.0   ;;  %v334_v47 = vmov 0.0   ;;  %s436_s0 = inlined_call_operand.vmem [shape: f32[1,16,16], index: 0, kind: input, shape index: {}]   ;;  %s437_s1 = inlined_call_operand.vmem [shape: f32[1,16,16], index: 1, kind: output, shape index: {}]  }
   0x1   :  { %v34_v3 = vld [vmem:[%s436_s0 + $0x8] sm:$0xff]  ;;  %v32_v36 = vld [vmem:[%s436_s0] sm:$0xff] }
   0x2   :  { %v345_v1 = vand.u32 127, %v39_v0  ;;  %v347_v2 = vshrl.u32 %v39_v0, 7 }
   0x4   :  { %vm41_vm0 = vcmp.lt.s32.totalorder %v345_v1, 16  ;;  %v60_v4 = vadd.s32 8, %v347_v2  ;;  %vm87_vm4 = vcmp.eq.s32.totalorder %v345_v1, 15  ;;  %vm95_vm6 = vcmp.eq.s32.totalorder %v345_v1, 14 }
   0x5   :  { %v88_v11 = vsel %vm87_vm4, 1.0, %v333_v10  ;;  %vm105_vm7 = vcmp.eq.s32.totalorder %v345_v1, 13  ;;  %vm115_vm8 = vcmp.eq.s32.totalorder %v345_v1, 12  ;;  %vm125_vm9 = vcmp.eq.s32.totalorder %v345_v1, 11 }
   0x6   :  { %vm61_vm1 = vcmp.eq.s32.totalorder %v60_v4, %v345_v1  ;;  %vm66_vm2 = vcmp.le.s32.totalorder %v60_v4, %v345_v1  ;;  %vm84_vm5 = vcmp.eq.s32.totalorder %v345_v1, %v60_v4  ;;  %vm45_vm10 = vcmp.eq.s32.totalorder %v347_v2, %v345_v1 }
   0x7   :  { %v63_v5 = vsel %vm61_vm1, %v34_v3, 0.0  ;;  %vm67_vm3 = vmand %vm66_vm2, %vm41_vm0  ;;  %v89_v12 = vsel %vm84_vm5, %v88_v11, 0.0  ;;  %v47_v37 = vsel %vm45_vm10, %v32_v36, 0.0  ;;  %vm135_vm11 = vcmp.eq.s32.totalorder %v345_v1, 10 }
   0x8   :  { %v68_v6 = vsel %vm67_vm3, %v34_v3, 0.0  ;;  %64 = vadd.xlane.f32.xlu0 %v63_v5  ;;  %vm50_vm12 = vcmp.le.s32.totalorder %v347_v2, %v345_v1  ;;  %vm77_vm14 = vcmp.eq.s32.totalorder %v345_v1, %v347_v2  ;;  %vm145_vm15 = vcmp.eq.s32.totalorder %v345_v1, 9 }
   0x9   :  { %vm51_vm13 = vmand %vm50_vm12, %vm41_vm0  ;;  %v78_v48 = vsel %vm77_vm14, -1.0, %v334_v47  ;;  %vm165_vm0 = vcmp.eq.s32.totalorder %v345_v1, 7  ;;  %vm155_vm1 = vcmp.eq.s32.totalorder %v345_v1, 8  ;;  %vm179_vm2 = vcmp.eq.s32.totalorder %v345_v1, 6 }
   0xa   :  { %v52_v44 = vsel %vm51_vm13, %v32_v36, 0.0  ;;  %vm193_vm3 = vcmp.eq.s32.totalorder %v345_v1, 5  ;;  %vm207_vm4 = vcmp.eq.s32.totalorder %v345_v1, 4  ;;  %vm221_vm5 = vcmp.eq.s32.totalorder %v345_v1, 3 }
  0x91   :  { %v358_v7 = vpop.xlane.xlu0 %64 }
  0x92   :  { %329 = vrcp.f32 %v358_v7  ;;  %vm278_vm10 = vweird.f32 %v358_v7 }
  0x9f   :  { %v361_v8 = vpop.eup %329 }
  0xa0   :  { %v70_v9 = vmul.f32 %v361_v8, %v68_v6 }
  0xa2   :  { %71 = vst [vmem:[#allocation2 + $0x8] sm:$0xff] %v70_v9 }
  0xa9   :  { %v91_v13 = vld [vmem:[#allocation2 + $0xe] ss:$0 sm:$0xff]  ;;  %v101_v16 = vld [vmem:[#allocation2 + $0xd] ss:$0 sm:$0xff]  ;;  %v111_v21 = vld [vmem:[#allocation2 + $0xc] ss:$0 sm:$0xff] }
  0xaa   :  { %v92_v14 = vxor.u32 2147483648, %v91_v13  ;;  %v102_v18 = vxor.u32 2147483648, %v101_v16  ;;  %v112_v23 = vxor.u32 2147483648, %v111_v21  ;;  %v121_v26 = vld [vmem:[#allocation2 + $0xb] ss:$0 sm:$0xff] }
  0xab   :  { %v122_v28 = vxor.u32 2147483648, %v121_v26  ;;  %v131_v31 = vld [vmem:[#allocation2 + $0xa] ss:$0 sm:$0xff]  ;;  %v141_v38 = vld [vmem:[#allocation2 + $0x9] ss:$0 sm:$0xff] }
  0xac   :  { %v96_v15 = vmul.f32 %v92_v14, %v89_v12  ;;  %v132_v33 = vxor.u32 2147483648, %v131_v31  ;;  %v142_v40 = vxor.u32 2147483648, %v141_v38  ;;  %v151_v52 = vld [vmem:[#allocation2 + $0x8] ss:$0 sm:$0xff] }
  0xad   :  { %v152_v54 = vxor.u32 2147483648, %v151_v52 }
  0xae   :  { %97 = vadd.xlane.f32.xlu0 %v96_v15 }
 0x137   :  { %v98_v17 = vpop.xlane.xlu0 %97 }
 0x138   :  { %v99_v19 = vsel %vm95_vm6, %v98_v17, %v89_v12  ;;  %vm235_vm6 = vcmp.eq.s32.totalorder %v345_v1, 2 }
 0x139   :  { %v106_v20 = vmul.f32 %v102_v18, %v99_v19 }
 0x13b   :  { %107 = vadd.xlane.f32.xlu1 %v106_v20 }
 0x1c4   :  { %v108_v22 = vpop.xlane.xlu1 %107 }
 0x1c5   :  { %v109_v24 = vsel %vm105_vm7, %v108_v22, %v99_v19  ;;  %vm249_vm7 = vcmp.eq.s32.totalorder %v345_v1, 1 }
 0x1c6   :  { %v116_v25 = vmul.f32 %v112_v23, %v109_v24 }
 0x1c8   :  { %117 = vadd.xlane.f32.xlu1 %v116_v25 }
 0x251   :  { %v118_v27 = vpop.xlane.xlu1 %117 }
 0x252   :  { %v119_v29 = vsel %vm115_vm8, %v118_v27, %v109_v24  ;;  %vm262_vm8 = vcmp.eq.s32.totalorder %v345_v1, 0 }
 0x253   :  { %v126_v30 = vmul.f32 %v122_v28, %v119_v29 }
 0x255   :  { %127 = vadd.xlane.f32.xlu0 %v126_v30 }
 0x2de   :  { %v128_v32 = vpop.xlane.xlu0 %127 }
 0x2df   :  { %v129_v34 = vsel %vm125_vm9, %v128_v32, %v119_v29 }
 0x2e0   :  { %v136_v35 = vmul.f32 %v132_v33, %v129_v34 }
 0x2e2   :  { %137 = vadd.xlane.f32.xlu1 %v136_v35 }
 0x2e6   :  { %48 = vadd.xlane.f32.xlu1 %v47_v37 }
 0x36b   :  { %v138_v39 = vpop.xlane.xlu1 %137 }
 0x36c   :  { %v139_v41 = vsel %vm135_vm11, %v138_v39, %v129_v34 }
 0x36d   :  { %v146_v42 = vmul.f32 %v142_v40, %v139_v41 }
 0x36f   :  { %147 = vadd.xlane.f32.xlu0 %v146_v42  ;;  %v376_v43 = vpop.xlane.xlu1 %48 }
 0x370   :  { %331 = vrcp.f32 %v376_v43  ;;  %vm273_vm9 = vweird.f32 %v376_v43 }
 0x37d   :  { %v383_v45 = vpop.eup %331 }
 0x37e   :  { %v54_v46 = vmul.f32 %v383_v45, %v52_v44 }
 0x380   :  { %55 = vst [vmem:[#allocation2] sm:$0xff] %v54_v46 }
 0x387   :  { %v161_v49 = vld [vmem:[#allocation2 + $0x7] ss:$0 sm:$0xff]  ;;  %v175_v57 = vld [vmem:[#allocation2 + $0x6] ss:$0 sm:$0xff]  ;;  %v189_v2 = vld [vmem:[#allocation2 + $0x5] ss:$0 sm:$0xff] }
 0x388   :  { %v162_v50 = vxor.u32 2147483648, %v161_v49  ;;  %v176_v58 = vxor.u32 2147483648, %v175_v57  ;;  %v190_v4 = vxor.u32 2147483648, %v189_v2  ;;  %v203_v12 = vld [vmem:[#allocation2 + $0x4] ss:$0 sm:$0xff] }
 0x389   :  { %v204_v14 = vxor.u32 2147483648, %v203_v12  ;;  %v217_v20 = vld [vmem:[#allocation2 + $0x3] ss:$0 sm:$0xff]  ;;  %v231_v28 = vld [vmem:[#allocation2 + $0x2] ss:$0 sm:$0xff] }
 0x38a   :  { %v166_v51 = vmul.f32 %v162_v50, %v78_v48  ;;  %v218_v22 = vxor.u32 2147483648, %v217_v20  ;;  %v232_v30 = vxor.u32 2147483648, %v231_v28  ;;  %v245_v36 = vld [vmem:[#allocation2 + $0x1] ss:$0 sm:$0xff]  ;;  %v258_v46 = vld [vmem:[#allocation2] ss:$0 sm:$0xff] }
 0x38b   :  { %v246_v38 = vxor.u32 2147483648, %v245_v36 }
 0x38c   :  { %167 = vadd.xlane.f32.xlu1 %v166_v51 }
 0x3f8   :  { %v148_v53 = vpop.xlane.xlu0 %147 }
 0x3f9   :  { %v149_v55 = vsel %vm145_vm15, %v148_v53, %v139_v41 }
 0x3fa   :  { %v156_v56 = vmul.f32 %v152_v54, %v149_v55 }
 0x3fc   :  { %157 = vadd.xlane.f32.xlu0 %v156_v56 }
 0x415   :  { %v168_v59 = vpop.xlane.xlu1 %167 }
 0x416   :  { %v169_v60 = vsel %vm165_vm0, %v168_v59, %v78_v48  ;;  %v259_v48 = vxor.u32 2147483648, %v258_v46 }
 0x417   :  { %v180_v61 = vmul.f32 %v176_v58, %v169_v60 }
 0x419   :  { %181 = vadd.xlane.f32.xlu1 %v180_v61 }
 0x485   :  { %v158_v62 = vpop.xlane.xlu0 %157 }
 0x486   :  { %v159_v63 = vsel %vm155_vm1, %v158_v62, %v149_v55 }
 0x487   :  { %v170_v0 = vmul.f32 %v162_v50, %v159_v63 }
 0x489   :  { %171 = vadd.xlane.f32.xlu0 %v170_v0 }
 0x4a2   :  { %v182_v3 = vpop.xlane.xlu1 %181 }
 0x4a3   :  { %v183_v5 = vsel %vm179_vm2, %v182_v3, %v169_v60 }
 0x4a4   :  { %v194_v6 = vmul.f32 %v190_v4, %v183_v5 }
 0x4a6   :  { %195 = vadd.xlane.f32.xlu1 %v194_v6 }
 0x512   :  { %v172_v9 = vpop.xlane.xlu0 %171 }
 0x513   :  { %v173_v10 = vsel %vm165_vm0, %v172_v9, %v159_v63 }
 0x514   :  { %v184_v11 = vmul.f32 %v176_v58, %v173_v10 }
 0x516   :  { %185 = vadd.xlane.f32.xlu0 %v184_v11 }
 0x52f   :  { %v196_v13 = vpop.xlane.xlu1 %195 }
 0x530   :  { %v197_v15 = vsel %vm193_vm3, %v196_v13, %v183_v5 }
 0x531   :  { %v208_v16 = vmul.f32 %v204_v14, %v197_v15 }
 0x533   :  { %209 = vadd.xlane.f32.xlu1 %v208_v16 }
 0x59f   :  { %v186_v17 = vpop.xlane.xlu0 %185 }
 0x5a0   :  { %v187_v18 = vsel %vm179_vm2, %v186_v17, %v173_v10 }
 0x5a1   :  { %v198_v19 = vmul.f32 %v190_v4, %v187_v18 }
 0x5a3   :  { %199 = vadd.xlane.f32.xlu0 %v198_v19 }
 0x5bc   :  { %v210_v21 = vpop.xlane.xlu1 %209 }
 0x5bd   :  { %v211_v23 = vsel %vm207_vm4, %v210_v21, %v197_v15 }
 0x5be   :  { %v222_v24 = vmul.f32 %v218_v22, %v211_v23 }
 0x5c0   :  { %223 = vadd.xlane.f32.xlu1 %v222_v24 }
 0x62c   :  { %v200_v25 = vpop.xlane.xlu0 %199 }
 0x62d   :  { %v201_v26 = vsel %vm193_vm3, %v200_v25, %v187_v18 }
 0x62e   :  { %v212_v27 = vmul.f32 %v204_v14, %v201_v26 }
 0x630   :  { %213 = vadd.xlane.f32.xlu0 %v212_v27 }
 0x649   :  { %v224_v29 = vpop.xlane.xlu1 %223 }
 0x64a   :  { %v225_v31 = vsel %vm221_vm5, %v224_v29, %v211_v23 }
 0x64b   :  { %v236_v32 = vmul.f32 %v232_v30, %v225_v31 }
 0x64d   :  { %237 = vadd.xlane.f32.xlu1 %v236_v32 }
 0x6b9   :  { %v214_v33 = vpop.xlane.xlu0 %213 }
 0x6ba   :  { %v215_v34 = vsel %vm207_vm4, %v214_v33, %v201_v26 }
 0x6bb   :  { %v226_v35 = vmul.f32 %v218_v22, %v215_v34 }
 0x6bd   :  { %227 = vadd.xlane.f32.xlu0 %v226_v35 }
 0x6d6   :  { %v238_v37 = vpop.xlane.xlu1 %237 }
 0x6d7   :  { %v239_v39 = vsel %vm235_vm6, %v238_v37, %v225_v31 }
 0x6d8   :  { %v250_v40 = vmul.f32 %v246_v38, %v239_v39 }
 0x6da   :  { %251 = vadd.xlane.f32.xlu1 %v250_v40 }
 0x746   :  { %v228_v41 = vpop.xlane.xlu0 %227 }
 0x747   :  { %v229_v42 = vsel %vm221_vm5, %v228_v41, %v215_v34 }
 0x748   :  { %v240_v44 = vmul.f32 %v232_v30, %v229_v42 }
 0x74a   :  { %241 = vadd.xlane.f32.xlu0 %v240_v44 }
 0x763   :  { %v252_v47 = vpop.xlane.xlu1 %251 }
 0x764   :  { %v253_v49 = vsel %vm249_vm7, %v252_v47, %v239_v39 }
 0x765   :  { %v263_v50 = vmul.f32 %v259_v48, %v253_v49 }
 0x767   :  { %264 = vadd.xlane.f32.xlu1 %v263_v50 }
 0x7d3   :  { %v242_v51 = vpop.xlane.xlu0 %241 }
 0x7d4   :  { %v243_v52 = vsel %vm235_vm6, %v242_v51, %v229_v42 }
 0x7d5   :  { %v254_v53 = vmul.f32 %v246_v38, %v243_v52 }
 0x7d7   :  { %255 = vadd.xlane.f32.xlu0 %v254_v53 }
 0x7f0   :  { %v265_v54 = vpop.xlane.xlu1 %264 }
 0x7f1   :  { %v266_v55 = vsel %vm262_vm8, %v265_v54, %v253_v49 }
 0x7f2   :  { %v272_v56 = vmul.f32 %v383_v45, %v266_v55 }
 0x7f4   :  { %v274_v57 = vsel %vm273_vm9, %v266_v55, %v272_v56 }
 0x7f5   :  { %313 = vst [vmem:[%s437_s1] sm:$0xff] %v274_v57 }
 0x860   :  { %v256_v58 = vpop.xlane.xlu0 %255 }
 0x861   :  { %v257_v59 = vsel %vm249_vm7, %v256_v58, %v243_v52 }
 0x862   :  { %v267_v60 = vmul.f32 %v259_v48, %v257_v59 }
 0x864   :  { %268 = vadd.xlane.f32.xlu0 %v267_v60 }
 0x8ed   :  { %v269_v61 = vpop.xlane.xlu0 %268 }
 0x8ee   :  { %v270_v62 = vsel %vm262_vm8, %v269_v61, %v257_v59 }
 0x8ef   :  { %v277_v63 = vmul.f32 %v361_v8, %v270_v62 }
 0x8f1   :  { %v279_v45 = vsel %vm278_vm10, %v270_v62, %v277_v63 }
 0x8f2   :  { %315 = vst [vmem:[%s437_s1 + $0x8] sm:$0xff] %v279_v45 }

// kernel: sub.1
= control target key start
LH: loop header
LB: loop body
LE: loop exit
PB: predicated region body
PF: predicated region fallthrough
CT: control target
= control target key end

     0   :  { %s34_s0 = inlined_call_operand.vmem [shape: f32[16], index: 0, kind: input, shape index: {}]   ;;  %s35_s1 = inlined_call_operand.vmem [shape: f32[16], index: 1, kind: input, shape index: {}]   ;;  %s36_s2 = inlined_call_operand.vmem [shape: f32[16], index: 2, kind: output, shape index: {}]  }
   0x1   :  { %v3_v0 = vld [vmem:[%s34_s0] sm:$0x1] }
   0x2   :  { %v4_v1 = vld [vmem:[%s35_s1] sm:$0x1] }
   0x3   :  { %v7_v2 = vsub.f32 %v3_v0, %v4_v1 }
   0x5   :  { %9 = vst [vmem:[%s36_s2] sm:$0x1] %v7_v2 }

// kernel: _enc_dec_impl.1
= control target key start
LH: loop header
LB: loop body
LE: loop exit
PB: predicated region body
PF: predicated region fallthrough
CT: control target
= control target key end

     0   :  { %v466_v3 = vmov 0.0   ;;  %v467_v4 = vmov 0   ;;  %vm44_vm0 = vcmask 130048   ;;  %s664_s0 = inlined_call_operand.vmem [shape: f32[16,256], index: 0, kind: input, shape index: {}]   ;;  %s665_s1 = inlined_call_operand.vmem [shape: f32[16,16], index: 1, kind: input, shape index: {}]   ;;  %s666_s2 = inlined_call_operand.vmem [shape: f32[16,1], index: 2, kind: input, shape index: {}]   ;;  %s667_s4 = inlined_call_operand.vmem [shape: f32[64,1], index: 4, kind: input, shape index: {}]   ;;  %s668_s6 = inlined_call_operand.vmem [shape: f32[16,1], index: 6, kind: input, shape index: {}]   ;;  %s669_s3 = inlined_call_operand.vmem [shape: f32[64,16], index: 3, kind: input, shape index: {}]   ;;  %s670_s7 = inlined_call_operand.vmem [shape: f32[64,256], index: 7, kind: output, shape index: {}]   ;;  %s671_s5 = inlined_call_operand.vmem [shape: f32[16,16], index: 5, kind: input, shape index: {}]  }
   0x1   :  { %v31_v0 = vld [vmem:[%s664_s0 + $0x18] sm:$0xff]  ;;  %v30_v1 = vld [vmem:[%s664_s0 + $0x10] sm:$0xff]  ;;  %v29_v2 = vld [vmem:[%s664_s0 + $0x8] sm:$0xff]  ;;  %115 = vmatprep.mubr.f32.mxu0 %v466_v3  ;;  %464 = vset.pattern.permute.xlu0 %v467_v4 }
   0x2   :  { %79 = vmatprep.subr.mxu0 %v31_v0  ;;  %v28_v5 = vld [vmem:[%s664_s0] sm:$0xff]  ;;  %288 = vmatprep.mubr.f32.mxu1 %v466_v3  ;;  %v33_v7 = vld [vmem:[%s666_s2 + $0x8] sm:$0xff]  ;;  %v142_v11 = vld [vmem:[%s667_s4 + $0x10] sm:$0xff] }
   0x3   :  { %80 = vmatpush1.msra.mxu0 %v30_v1  ;;  %v26_v6 = vld [vmem:[%s665_s1] sm:$0xff]  ;;  %465 = vset.pattern.permute.xlu1 %v467_v4  ;;  %v27_v9 = vld [vmem:[%s665_s1 + $0x8] sm:$0xff]  ;;  %v147_v14 = vld [vmem:[%s667_s4 + $0x38] sm:$0xff] }
   0x4   :  { %81 = vmatprep.subr.mxu0 %v29_v2  ;;  %41 = vperm.xlu0 %464, %v33_v7   ;;  %v32_v8 = vld [vmem:[%s666_s2] sm:$0xff]  ;;  %v146_v15 = vld [vmem:[%s667_s4 + $0x30] sm:$0xff]  ;;  %v141_v16 = vld [vmem:[%s667_s4 + $0x8] sm:$0xff] }
   0x5   :  { %82 = vmatpush1.msra.mxu0 %v28_v5  ;;  %v140_v10 = vld [vmem:[%s667_s4] sm:$0xff]  ;;  %185 = vperm.xlu1 %465, %v147_v14   ;;  %v143_v17 = vld [vmem:[%s667_s4 + $0x18] sm:$0xff]  ;;  %v145_v18 = vld [vmem:[%s667_s4 + $0x28] sm:$0xff] }
   0x6   :  { %446 = vmatmul.mubr.msk.f32.vlgmr.msra.gmra.mxu0 %vm44_vm0, %v26_v6  ;;  %v144_v12 = vld [vmem:[%s667_s4 + $0x20] sm:$0xff]  ;;  %v344_v19 = vld [vmem:[%s668_s6 + $0x8] sm:$0xff]  ;;  %v134_v35 = vld [vmem:[%s669_s3 + $0x10] sm:$0xff] }
   0x7   :  { %121 = vmatprep.mubr.f32.mxu0 %v466_v3  ;;  %v343_v13 = vld [vmem:[%s668_s6] sm:$0xff]  ;;  %v135_v36 = vld [vmem:[%s669_s3 + $0x18] sm:$0xff]  ;;  %v133_v37 = vld [vmem:[%s669_s3 + $0x8] sm:$0xff] }
   0x8   :  { %36 = vperm.xlu0 %464, %v32_v8   ;;  %v132_v34 = vld [vmem:[%s669_s3] sm:$0xff]  ;;  %v137_v39 = vld [vmem:[%s669_s3 + $0x28] sm:$0xff]  ;;  %v138_v40 = vld [vmem:[%s669_s3 + $0x30] sm:$0xff] }
   0x9   :  { %180 = vperm.xlu1 %465, %v146_v15   ;;  %v136_v38 = vld [vmem:[%s669_s3 + $0x20] sm:$0xff]  ;;  %v139_v41 = vld [vmem:[%s669_s3 + $0x38] sm:$0xff] }
   0xa   :  { %447 = vmatmul.mubr.msk.f32.gmra.mxu0 %vm44_vm0, %v27_v9 }
   0xb   :  { %276 = vmatprep.mubr.f32.mxu0 %v466_v3 }
   0xc   :  { %150 = vperm.xlu0 %464, %v140_v10  }
   0xd   :  { %155 = vperm.xlu1 %465, %v141_v16  }
  0x10   :  { %160 = vperm.xlu0 %464, %v142_v11  }
  0x11   :  { %165 = vperm.xlu1 %465, %v143_v17  }
  0x14   :  { %170 = vperm.xlu0 %464, %v144_v12  }
  0x15   :  { %175 = vperm.xlu1 %465, %v145_v18  }
  0x18   :  { %347 = vperm.xlu0 %464, %v343_v13  }
  0x19   :  { %352 = vperm.xlu1 %465, %v344_v19  }
  0x7f   :  { %v42_v20 = vpop.permute.xlu0 %41 }
  0x80   :  { %v186_v42 = vpop.permute.xlu1 %185 }
  0x83   :  { %v37_v24 = vpop.permute.xlu0 %36 }
  0x84   :  { %v181_v43 = vpop.permute.xlu1 %180 }
  0x87   :  { %v151_v44 = vpop.permute.xlu0 %150 }
  0x88   :  { %v156_v45 = vpop.permute.xlu1 %155 }
  0x8b   :  { %v161_v46 = vpop.permute.xlu0 %160 }
  0x8c   :  { %v166_v51 = vpop.permute.xlu1 %165 }
  0x8f   :  { %v171_v0 = vpop.permute.xlu0 %170 }
  0x90   :  { %v176_v5 = vpop.permute.xlu1 %175 }
  0xc6   :  { %v117_v21 = vpop.f32.mrf.mxu0 }
  0xc7   :  { %v118_v29 = vadd.f32 %v117_v21, %v37_v24 }
  0xc8   :  { %v119_v22 = vpop.f32.mrf.mxu0 }
  0xc9   :  { %v120_v27 = vadd.f32 %v119_v22, %v37_v24  ;;  %v128_v33 = vmax.f32 %v118_v29, 0.0  ;;  %v342_v24 = vld [vmem:[%s671_s5 + $0x8] sm:$0xff] }
  0xca   :  { %v123_v23 = vpop.f32.mrf.mxu0 }
  0xcb   :  { %v124_v25 = vadd.f32 %v123_v23, %v42_v20  ;;  %v129_v32 = vmax.f32 %v120_v27, 0.0  ;;  %v341_v23 = vld [vmem:[%s671_s5] sm:$0xff] }
  0xcc   :  { %v125_v26 = vpop.f32.mrf.mxu0 }
  0xcd   :  { %v126_v28 = vadd.f32 %v125_v26, %v42_v20  ;;  %v130_v31 = vmax.f32 %v124_v25, 0.0  ;;  %v348_v25 = vpop.permute.xlu0 %347 }
  0xcf   :  { %v131_v30 = vmax.f32 %v126_v28, 0.0 }
  0xd1   :  { %240 = vmatprep.subr.mxu0 %v131_v30  ;;  %458 = vmatprep.subr.mxu1 %v131_v30  ;;  %v353_v30 = vpop.permute.xlu1 %352 }
  0xd2   :  { %241 = vmatpush1.msra.mxu0 %v130_v31  ;;  %460 = vmatpush1.msra.mxu1 %v130_v31 }
  0xd3   :  { %242 = vmatprep.subr.mxu0 %v129_v32  ;;  %459 = vmatprep.subr.mxu1 %v129_v32 }
  0xd4   :  { %243 = vmatpush1.msra.mxu0 %v128_v33  ;;  %461 = vmatpush1.msra.mxu1 %v128_v33 }
  0xd5   :  { %448 = vmatmul.mubr.msk.f32.vlgmr.msra.gmra.mxu0 %vm44_vm0, %v132_v34  ;;  %450 = vmatmul.mubr.msk.f32.vlgmr.msra.gmra.mxu1 %vm44_vm0, %v134_v35 }
  0xd6   :  { %294 = vmatprep.mubr.f32.mxu1 %v466_v3  ;;  %282 = vmatprep.mubr.f32.mxu0 %v466_v3 }
  0xd9   :  { %451 = vmatmul.mubr.msk.f32.gmra.mxu1 %vm44_vm0, %v135_v36  ;;  %449 = vmatmul.mubr.msk.f32.gmra.mxu0 %vm44_vm0, %v133_v37 }
  0xda   :  { %300 = vmatprep.mubr.f32.mxu1 %v466_v3  ;;  %425 = vmatprep.mubr.f32.mxu0 %v466_v3 }
  0xdd   :  { %452 = vmatmul.mubr.msk.f32.gmra.mxu1 %vm44_vm0, %v136_v38 }
  0xde   :  { %306 = vmatprep.mubr.f32.mxu1 %v466_v3 }
  0xe1   :  { %453 = vmatmul.mubr.msk.f32.gmra.mxu1 %vm44_vm0, %v137_v39 }
  0xe2   :  { %312 = vmatprep.mubr.f32.mxu1 %v466_v3 }
  0xe5   :  { %454 = vmatmul.mubr.msk.f32.gmra.mxu1 %vm44_vm0, %v138_v40 }
  0xe6   :  { %318 = vmatprep.mubr.f32.mxu1 %v466_v3 }
  0xe9   :  { %455 = vmatmul.mubr.msk.f32.gmra.mxu1 %vm44_vm0, %v139_v41 }
 0x195   :  { %v278_v47 = vpop.f32.mrf.mxu0  ;;  %v290_v48 = vpop.f32.mrf.mxu1 }
 0x196   :  { %v279_v49 = vadd.f32 %v278_v47, %v151_v44  ;;  %v291_v50 = vadd.f32 %v290_v48, %v161_v46 }
 0x197   :  { %v280_v52 = vpop.f32.mrf.mxu0  ;;  %v292_v53 = vpop.f32.mrf.mxu1 }
 0x198   :  { %325 = vst [vmem:[%s670_s7] sm:$0xff] %v279_v49  ;;  %329 = vst [vmem:[%s670_s7 + $0x20] sm:$0xff] %v291_v50  ;;  %v281_v54 = vadd.f32 %v280_v52, %v151_v44  ;;  %v293_v55 = vadd.f32 %v292_v53, %v161_v46 }
 0x199   :  { %v296_v56 = vpop.f32.mrf.mxu1  ;;  %v284_v57 = vpop.f32.mrf.mxu0 }
 0x19a   :  { %326 = vst [vmem:[%s670_s7 + $0x8] sm:$0xff] %v281_v54  ;;  %330 = vst [vmem:[%s670_s7 + $0x28] sm:$0xff] %v293_v55  ;;  %v297_v58 = vadd.f32 %v296_v56, %v166_v51  ;;  %v285_v59 = vadd.f32 %v284_v57, %v156_v45 }
 0x19b   :  { %v298_v60 = vpop.f32.mrf.mxu1  ;;  %v286_v61 = vpop.f32.mrf.mxu0 }
 0x19c   :  { %331 = vst [vmem:[%s670_s7 + $0x30] sm:$0xff] %v297_v58  ;;  %v299_v62 = vadd.f32 %v298_v60, %v166_v51  ;;  %327 = vst [vmem:[%s670_s7 + $0x10] sm:$0xff] %v285_v59  ;;  %v287_v63 = vadd.f32 %v286_v61, %v156_v45 }
 0x19d   :  { %v302_v1 = vpop.f32.mrf.mxu1 }
 0x19e   :  { %332 = vst [vmem:[%s670_s7 + $0x38] sm:$0xff] %v299_v62  ;;  %v303_v2 = vadd.f32 %v302_v1, %v171_v0  ;;  %328 = vst [vmem:[%s670_s7 + $0x18] sm:$0xff] %v287_v63 }
 0x19f   :  { %v304_v4 = vpop.f32.mrf.mxu1 }
 0x1a0   :  { %333 = vst [vmem:[%s670_s7 + $0x40] sm:$0xff] %v303_v2  ;;  %v305_v6 = vadd.f32 %v304_v4, %v171_v0 }
 0x1a1   :  { %v308_v7 = vpop.f32.mrf.mxu1 }
 0x1a2   :  { %334 = vst [vmem:[%s670_s7 + $0x48] sm:$0xff] %v305_v6  ;;  %v309_v8 = vadd.f32 %v308_v7, %v176_v5 }
 0x1a3   :  { %v310_v9 = vpop.f32.mrf.mxu1 }
 0x1a4   :  { %335 = vst [vmem:[%s670_s7 + $0x50] sm:$0xff] %v309_v8  ;;  %v311_v10 = vadd.f32 %v310_v9, %v176_v5 }
 0x1a5   :  { %v314_v11 = vpop.f32.mrf.mxu1 }
 0x1a6   :  { %336 = vst [vmem:[%s670_s7 + $0x58] sm:$0xff] %v311_v10  ;;  %v315_v18 = vadd.f32 %v314_v11, %v181_v43 }
 0x1a7   :  { %v316_v12 = vpop.f32.mrf.mxu1 }
 0x1a8   :  { %v317_v16 = vadd.f32 %v316_v12, %v181_v43  ;;  %v337_v22 = vmax.f32 %v315_v18, 0.0 }
 0x1a9   :  { %v320_v13 = vpop.f32.mrf.mxu1 }
 0x1aa   :  { %v321_v14 = vadd.f32 %v320_v13, %v186_v42  ;;  %v338_v21 = vmax.f32 %v317_v16, 0.0 }
 0x1ab   :  { %v322_v15 = vpop.f32.mrf.mxu1 }
 0x1ac   :  { %v323_v17 = vadd.f32 %v322_v15, %v186_v42  ;;  %v339_v20 = vmax.f32 %v321_v14, 0.0 }
 0x1ae   :  { %v340_v19 = vmax.f32 %v323_v17, 0.0 }
 0x1b0   :  { %389 = vmatprep.subr.mxu0 %v340_v19 }
 0x1b1   :  { %390 = vmatpush1.msra.mxu0 %v339_v20 }
 0x1b2   :  { %391 = vmatprep.subr.mxu0 %v338_v21 }
 0x1b3   :  { %392 = vmatpush1.msra.mxu0 %v337_v22 }
 0x1b4   :  { %456 = vmatmul.mubr.msk.f32.vlgmr.msra.gmra.mxu0 %vm44_vm0, %v341_v23 }
 0x1b5   :  { %431 = vmatprep.mubr.f32.mxu0 %v466_v3 }
 0x1b8   :  { %457 = vmatmul.mubr.msk.f32.gmra.mxu0 %vm44_vm0, %v342_v24 }
 0x274   :  { %v427_v26 = vpop.f32.mrf.mxu0 }
 0x275   :  { %v428_v27 = vadd.f32 %v427_v26, %v348_v25 }
 0x276   :  { %v429_v28 = vpop.f32.mrf.mxu0 }
 0x277   :  { %438 = vst [vmem:[%s670_s7 + $0x60] sm:$0xff] %v428_v27  ;;  %v430_v29 = vadd.f32 %v429_v28, %v348_v25 }
 0x278   :  { %v433_v31 = vpop.f32.mrf.mxu0 }
 0x279   :  { %439 = vst [vmem:[%s670_s7 + $0x68] sm:$0xff] %v430_v29  ;;  %v434_v3 = vadd.f32 %v433_v31, %v353_v30 }
 0x27a   :  { %v435_v32 = vpop.f32.mrf.mxu0 }
 0x27b   :  { %440 = vst [vmem:[%s670_s7 + $0x70] sm:$0xff] %v434_v3  ;;  %v436_v33 = vadd.f32 %v435_v32, %v353_v30 }
 0x27d   :  { %441 = vst [vmem:[%s670_s7 + $0x78] sm:$0xff] %v436_v33 }

</bundles_post_ra>
